<compile_context>
chip_gen: v7x
topology: tpu7x:2x2x1
jax: 0.10.0
libtpu: 0.0.40
codegen_flags: <defaults>
</compile_context>

<pallas_src>
import functools

import jax
import jax.numpy as jnp
from jax.experimental import pallas as pl
from jax.experimental.pallas import tpu as pltpu


# ----------------------------------------------------------------------------- helpers
def _cdiv(a, b):
    return (a + b - 1) // b


def _round_up(x, m):
    return _cdiv(x, m) * m


def _sublane(dtype):
    """Packed sublane multiple: 8 for f32, 16 for bf16, 32 for int8/fp8."""
    return max(8, 32 // jnp.dtype(dtype).itemsize)


def _vmem_capacity_bytes():
    """Physical VMEM (128 MiB on v5e/v6e, 64 MiB per TC on v7x)."""
    try:
        return int(pltpu.get_tpu_info().vmem_capacity_bytes)
    except Exception:
        return 64 << 20  # conservative fallback (v7x-sized)


def _resident_param_spec(shape):
    """Constant-index block -> VMEM-resident across all grid steps; single
    buffer (no pointless double-buffering of never-changing blocks)."""
    try:
        return pl.BlockSpec(shape, lambda i: (0, 0), pipeline_mode=pl.Buffered(1))
    except Exception:  # older jax without pipeline_mode / Buffered
        return pl.BlockSpec(shape, lambda i: (0, 0))


def _choose_tile_b(batch, sublane, per_row_bytes, tile_budget_bytes, requested):
    if requested is not None:
        tile_b = _round_up(int(requested), sublane)          # dtype-aware rounding
    else:
        tile_b = tile_budget_bytes // max(per_row_bytes, 1)  # fill the VMEM budget
        tile_b = (tile_b // sublane) * sublane
        tile_b = max(sublane, min(tile_b, 2048))
    # never larger than the (sublane-rounded) batch
    tile_b = min(tile_b, _round_up(batch, sublane))
    # keep >= 2 grid steps when batch allows (v7x has 2 TCs; ~free elsewhere)
    if batch > sublane:
        tile_b = min(tile_b, max(sublane, _round_up(_cdiv(batch, 2), sublane)))
    return max(tile_b, sublane)


# ----------------------------------------------------------------------------- kernel
def mlp_kernel(*refs, n_layers):
    """Fused MLP: (Linear -> ReLU) x (n_layers-1) -> Linear.

    refs = (x_ref, w0_ref, b0_ref, w1_ref, b1_ref, ..., out_ref)
    Weights are [in, out] (pre-transposed); biases are [1, out] (f32).
    Operands go to the MXU in their native dtype; accumulation is f32.
    """
    x_ref = refs[0]
    out_ref = refs[-1]
    param_refs = refs[1:-1]

    operand_dtype = x_ref.dtype
    h = x_ref[...]
    for layer in range(n_layers):
        w = param_refs[2 * layer][...]
        b = param_refs[2 * layer + 1][...]
        acc = jnp.dot(h, w, preferred_element_type=jnp.float32)   # MXU, f32 acc
        acc = acc + b.astype(jnp.float32)
        if layer < n_layers - 1:
            acc = jnp.maximum(acc, 0.0)                           # ReLU in f32
            h = acc.astype(operand_dtype)                         # native dtype to MXU
        else:
            h = acc
    out_ref[...] = h.astype(out_ref.dtype)


# ----------------------------------------------------------------------------- params
def prepare_params(weights, biases, operand_dtype=None):
    """One-time prep: torch-style [out, in] -> [in, out]; bias -> [1, out].

    Biases are kept f32 (they are added to the f32 accumulator). Pass e.g.
    operand_dtype=jnp.bfloat16 to cast the weights to the MXU operand dtype.
    """
    wt, b2 = [], []
    for w, b in zip(weights, biases):
        w = jnp.asarray(w).T
        if operand_dtype is not None:
            w = w.astype(operand_dtype)
        wt.append(w)
        b2.append(jnp.asarray(b).astype(jnp.float32).reshape(1, -1))
    return tuple(wt), tuple(b2)


# ----------------------------------------------------------------------------- forward
@functools.partial(jax.jit,
                   static_argnames=("n_group", "n_input", "tile_b", "output_layout"))
def subspace_mlp_forward(embeddings, wt, b2, *, n_group, n_input,
                         tile_b=None, output_layout="flat"):
    """Fused SubSpaceMLP forward.

    output_layout="flat"   -> (batch, n_group*n_input)   lane-dense (default)
    output_layout="grouped"-> (batch, n_input, n_group)   == torch .view semantics
    """
    assert len(wt) == len(b2) and len(wt) >= 1
    n_layers = len(wt)
    batch, n_in = embeddings.shape
    assert n_in == wt[0].shape[0]
    out_dim = wt[-1].shape[1]
    assert out_dim == n_group * n_input

    # Feed the MXU in the parameter dtype; explicit cast -> no silent promotion.
    operand_dtype = wt[0].dtype
    x = embeddings if embeddings.dtype == operand_dtype else embeddings.astype(operand_dtype)

    itemsize = jnp.dtype(operand_dtype).itemsize
    sublane = _sublane(operand_dtype)

    # ---- static VMEM budgeting / tile selection (trace-time Python) ----
    param_bytes = sum(int(w.size) * w.dtype.itemsize for w in wt) + \
                  sum(int(b.size) * b.dtype.itemsize for b in b2)
    max_feat = max([n_in] + [w.shape[1] for w in wt])

    vmem_capacity = _vmem_capacity_bytes()                       # 128 MiB v5e/v6e, 64 MiB v7x
    vmem_ceiling = max(vmem_capacity - (16 << 20), 32 << 20)     # compiler headroom

    if param_bytes > vmem_ceiling - (8 << 20):
        # TODO(synk): add a weight-streaming fallback (K/N-tiled grid axis with an
        # f32 accumulator + pl.when init/finalize) for models whose resident params
        # do not fit VMEM (matters on v7x's 64 MiB).
        raise ValueError(
            f"resident params ({param_bytes >> 20} MiB) exceed the VMEM budget "
            f"({vmem_ceiling >> 20} MiB); weight-streaming path not implemented")

    # Per batch-row VMEM: double-buffered x/out tiles + f32 activation scratch.
    per_row_bytes = 2 * (n_in + out_dim) * itemsize + 2 * max_feat * 4
    tile_budget = vmem_ceiling - param_bytes - (4 << 20)
    tile_b = _choose_tile_b(batch, sublane, per_row_bytes, tile_budget, tile_b)

    # No batch padding: Pallas masks the partial trailing block itself.
    grid = (_cdiv(batch, tile_b),)

    # ---- specs: x / out tiled along batch; params VMEM-resident, single-buffered ----
    args = [x]
    in_specs = [pl.BlockSpec((tile_b, n_in), lambda i: (i, 0))]
    for w, b in zip(wt, b2):
        args.extend([w, b])
        in_specs.append(_resident_param_spec(w.shape))
        in_specs.append(_resident_param_spec(b.shape))
    out_specs = pl.BlockSpec((tile_b, out_dim), lambda i: (i, 0))

    flops = sum(2 * batch * w.shape[0] * w.shape[1] for w in wt)
    io_bytes = batch * (n_in + out_dim) * itemsize + param_bytes
    cost = pl.CostEstimate(flops=flops, transcendentals=0, bytes_accessed=io_bytes)

    vmem_budget = (param_bytes                                    # single-buffered params
                   + 2 * tile_b * (n_in + out_dim) * itemsize     # double-buffered x/out
                   + 2 * tile_b * max_feat * 4                    # f32 activation scratch
                   + (4 << 20))                                   # slack
    vmem_limit = int(min(max(vmem_budget, 16 << 20), vmem_ceiling))

    flat_out = pl.pallas_call(
        functools.partial(mlp_kernel, n_layers=n_layers),
        out_shape=jax.ShapeDtypeStruct((batch, out_dim), operand_dtype),
        grid=grid,
        in_specs=in_specs,
        out_specs=out_specs,
        compiler_params=pltpu.CompilerParams(
            dimension_semantics=("parallel",),
            vmem_limit_bytes=vmem_limit,
        ),
        cost_estimate=cost,
    )(*args)

    if output_layout == "flat":
        return flat_out                                   # lane-dense, preferred
    elif output_layout == "grouped":
        # torch: .view(batch, n_input, n_group) == row-major reshape of flat features.
        return flat_out.reshape(batch, n_input, n_group)
    raise ValueError(f"unknown output_layout: {output_layout}")


# ----------------------------------------------------------------------------- reference
def init_params(key, n_group, n_input, n_layer, n_hidden, dtype=jnp.float32):
    """Deterministic torch-nn.Linear-style init: U(-1/sqrt(fan_in), 1/sqrt(fan_in))."""
    dims_in, dims_out = [], []
    in_ = n_input
    for _ in range(n_layer - 1):
        dims_in.append(in_)
        dims_out.append(n_hidden)
        in_ = n_hidden
    dims_in.append(in_)
    dims_out.append(n_group * n_input)

    weights, biases = [], []
    for fan_in, fan_out in zip(dims_in, dims_out):
        key, kw, kb = jax.random.split(key, 3)
        bound = 1.0 / jnp.sqrt(jnp.asarray(fan_in, dtype))
        weights.append(jax.random.uniform(kw, (fan_out, fan_in), dtype, -bound, bound))
        biases.append(jax.random.uniform(kb, (fan_out,), dtype, -bound, bound))
    return weights, biases


def reference_forward_flat(x, weights, biases, operand_dtype=None):
    """Plain-JAX reference producing the flat (batch, n_group*n_input) features."""
    h = x if operand_dtype is None else x.astype(operand_dtype)
    n_layers = len(weights)
    for i, (w, b) in enumerate(zip(weights, biases)):
        w_op = w if operand_dtype is None else w.astype(operand_dtype)
        h = jnp.dot(h, w_op.T, preferred_element_type=jnp.float32) + b.astype(jnp.float32)
        if i < n_layers - 1:
            h = jnp.maximum(h, 0.0)
            if operand_dtype is not None:
                h = h.astype(operand_dtype)
    return h


# ----------------------------------------------------------------------------- demo
if __name__ == "__main__":
    # Small shapes consistent with the module; feature dims are 128-multiples.
    n_group, n_input, n_layer, n_hidden = 3, 128, 3, 128
    batch = 20   # NOT a tile multiple -> exercises the partial trailing block

    key = jax.random.PRNGKey(0)
    key, kx = jax.random.split(key)
    embeddings = jax.random.normal(kx, (batch, n_input), jnp.float32)

    weights, biases = init_params(key, n_group, n_input, n_layer, n_hidden)

    ref_flat = reference_forward_flat(embeddings, weights, biases)
    ref_grouped = ref_flat.reshape(batch, n_input, n_group)

    # ---- f32 operand path, explicit small tile_b (multi-step grid + partial block) ----
    wt32, b32 = prepare_params(weights, biases)
    out_flat = subspace_mlp_forward(embeddings, wt32, b32,
                                    n_group=n_group, n_input=n_input, tile_b=8)
    out_flat = jax.block_until_ready(out_flat)
    assert out_flat.shape == (batch, n_group * n_input), out_flat.shape
    assert jnp.allclose(out_flat, ref_flat, atol=1e-4, rtol=1e-4), "f32 flat mismatch"

    out_grouped = subspace_mlp_forward(embeddings, wt32, b32,
                                       n_group=n_group, n_input=n_input,
                                       tile_b=8, output_layout="grouped")
    out_grouped = jax.block_until_ready(out_grouped)
    assert out_grouped.shape == (batch, n_input, n_group), out_grouped.shape
    assert jnp.allclose(out_grouped, ref_grouped, atol=1e-4, rtol=1e-4), "grouped mismatch"

    # ---- bf16 operand path (MXU-native on v6e/v7x), auto tile_b from VMEM budget ----
    wt16, b16 = prepare_params(weights, biases, operand_dtype=jnp.bfloat16)
    out_bf16 = subspace_mlp_forward(embeddings, wt16, b16,
                                    n_group=n_group, n_input=n_input)
    out_bf16 = jax.block_until_ready(out_bf16)
    assert out_bf16.shape == (batch, n_group * n_input), out_bf16.shape
    assert out_bf16.dtype == jnp.bfloat16, out_bf16.dtype
    ref_bf16 = reference_forward_flat(embeddings, weights, biases,
                                      operand_dtype=jnp.bfloat16)
    assert jnp.allclose(out_bf16.astype(jnp.float32), ref_bf16, atol=2e-2, rtol=2e-2), \
        "bf16 path mismatch vs bf16 reference"

    print("KERNEL_OK")
</pallas_src>

<mosaic_0001>
module attributes {stable_mosaic.version = 11 : i64} {
  func.func @mlp_kernel(%arg0: i32, %arg1: memref<8x128xf32, #tpu.memory_space<vmem>>, %arg2: memref<128x128xf32, #tpu.memory_space<vmem>>, %arg3: memref<1x128xf32, #tpu.memory_space<vmem>>, %arg4: memref<128x128xf32, #tpu.memory_space<vmem>>, %arg5: memref<1x128xf32, #tpu.memory_space<vmem>>, %arg6: memref<128x384xf32, #tpu.memory_space<vmem>>, %arg7: memref<1x384xf32, #tpu.memory_space<vmem>>, %arg8: memref<8x384xf32, #tpu.memory_space<vmem>>) attributes {dimension_semantics = [#tpu.dimension_semantics<parallel>], iteration_bounds = array<i64: 3>, scalar_prefetch = 0 : i64, scratch_operands = 0 : i64, tpu.core_type = #tpu.core_type<tc>, window_params = [{transform_indices = @transform_0, window_bounds = array<i64: 8, 128>}, {pipeline_mode = #tpu.pipeline_mode<synchronous>, transform_indices = @transform_1, window_bounds = array<i64: 128, 128>}, {pipeline_mode = #tpu.pipeline_mode<synchronous>, transform_indices = @transform_2, window_bounds = array<i64: 1, 128>}, {pipeline_mode = #tpu.pipeline_mode<synchronous>, transform_indices = @transform_3, window_bounds = array<i64: 128, 128>}, {pipeline_mode = #tpu.pipeline_mode<synchronous>, transform_indices = @transform_4, window_bounds = array<i64: 1, 128>}, {pipeline_mode = #tpu.pipeline_mode<synchronous>, transform_indices = @transform_5, window_bounds = array<i64: 128, 384>}, {pipeline_mode = #tpu.pipeline_mode<synchronous>, transform_indices = @transform_6, window_bounds = array<i64: 1, 384>}, {transform_indices = @transform_7, window_bounds = array<i64: 8, 384>}]} {
    %c0 = arith.constant 0 : index
    %c0_0 = arith.constant 0 : index
    %0 = vector.load %arg1[%c0, %c0_0] : memref<8x128xf32, #tpu.memory_space<vmem>>, vector<8x128xf32>
    %c0_1 = arith.constant 0 : index
    %c0_2 = arith.constant 0 : index
    %1 = vector.load %arg2[%c0_1, %c0_2] : memref<128x128xf32, #tpu.memory_space<vmem>>, vector<128x128xf32>
    %c0_3 = arith.constant 0 : index
    %c0_4 = arith.constant 0 : index
    %2 = vector.load %arg3[%c0_3, %c0_4] : memref<1x128xf32, #tpu.memory_space<vmem>>, vector<1x128xf32>
    %cst = arith.constant dense<0.000000e+00> : vector<8x128xf32>
    %3 = tpu.matmul %0, %1, %cst {dimension_numbers = #tpu.dot_dimension_numbers<[1], [0], [0], [1], [0, 0, 1, 1], [], []>} : vector<8x128xf32>, vector<128x128xf32>, vector<8x128xf32> -> vector<8x128xf32>
    %4 = vector.broadcast %2 : vector<1x128xf32> to vector<8x128xf32>
    %5 = arith.addf %3, %4 : vector<8x128xf32>
    %cst_5 = arith.constant 0.000000e+00 : f32
    %6 = vector.broadcast %cst_5 : f32 to vector<8x128xf32>
    %7 = arith.maximumf %5, %6 : vector<8x128xf32>
    %c0_6 = arith.constant 0 : index
    %c0_7 = arith.constant 0 : index
    %8 = vector.load %arg4[%c0_6, %c0_7] : memref<128x128xf32, #tpu.memory_space<vmem>>, vector<128x128xf32>
    %c0_8 = arith.constant 0 : index
    %c0_9 = arith.constant 0 : index
    %9 = vector.load %arg5[%c0_8, %c0_9] : memref<1x128xf32, #tpu.memory_space<vmem>>, vector<1x128xf32>
    %cst_10 = arith.constant dense<0.000000e+00> : vector<8x128xf32>
    %10 = tpu.matmul %7, %8, %cst_10 {dimension_numbers = #tpu.dot_dimension_numbers<[1], [0], [0], [1], [0, 0, 1, 1], [], []>} : vector<8x128xf32>, vector<128x128xf32>, vector<8x128xf32> -> vector<8x128xf32>
    %11 = vector.broadcast %9 : vector<1x128xf32> to vector<8x128xf32>
    %12 = arith.addf %10, %11 : vector<8x128xf32>
    %cst_11 = arith.constant 0.000000e+00 : f32
    %13 = vector.broadcast %cst_11 : f32 to vector<8x128xf32>
    %14 = arith.maximumf %12, %13 : vector<8x128xf32>
    %c0_12 = arith.constant 0 : index
    %c0_13 = arith.constant 0 : index
    %15 = vector.load %arg6[%c0_12, %c0_13] : memref<128x384xf32, #tpu.memory_space<vmem>>, vector<128x384xf32>
    %c0_14 = arith.constant 0 : index
    %c0_15 = arith.constant 0 : index
    %16 = vector.load %arg7[%c0_14, %c0_15] : memref<1x384xf32, #tpu.memory_space<vmem>>, vector<1x384xf32>
    %cst_16 = arith.constant dense<0.000000e+00> : vector<8x384xf32>
    %17 = tpu.matmul %14, %15, %cst_16 {dimension_numbers = #tpu.dot_dimension_numbers<[1], [0], [0], [1], [0, 0, 1, 1], [], []>} : vector<8x128xf32>, vector<128x384xf32>, vector<8x384xf32> -> vector<8x384xf32>
    %18 = vector.broadcast %16 : vector<1x384xf32> to vector<8x384xf32>
    %19 = arith.addf %17, %18 : vector<8x384xf32>
    %c0_17 = arith.constant 0 : index
    %c0_18 = arith.constant 0 : index
    %20 = vector.load %arg8[%c0_17, %c0_18] : memref<8x384xf32, #tpu.memory_space<vmem>>, vector<8x384xf32>
    tpu.vector_store %arg8[%c0_17, %c0_18], %19 {strides = array<i32>} : memref<8x384xf32, #tpu.memory_space<vmem>>, vector<8x384xf32>,
    return
  }
  func.func @transform_0(%arg0: i32) -> (i32, i32) {
    %c0_i32 = arith.constant 0 : i32
    %c0_i32_0 = arith.constant 0 : i32
    return %arg0, %c0_i32 : i32, i32
  }
  func.func @transform_1(%arg0: i32) -> (i32, i32) {
    %c0_i32 = arith.constant 0 : i32
    %c0_i32_0 = arith.constant 0 : i32
    %c0_i32_1 = arith.constant 0 : i32
    return %c0_i32, %c0_i32_0 : i32, i32
  }
  func.func @transform_2(%arg0: i32) -> (i32, i32) {
    %c0_i32 = arith.constant 0 : i32
    %c0_i32_0 = arith.constant 0 : i32
    %c0_i32_1 = arith.constant 0 : i32
    return %c0_i32, %c0_i32_0 : i32, i32
  }
  func.func @transform_3(%arg0: i32) -> (i32, i32) {
    %c0_i32 = arith.constant 0 : i32
    %c0_i32_0 = arith.constant 0 : i32
    %c0_i32_1 = arith.constant 0 : i32
    return %c0_i32, %c0_i32_0 : i32, i32
  }
  func.func @transform_4(%arg0: i32) -> (i32, i32) {
    %c0_i32 = arith.constant 0 : i32
    %c0_i32_0 = arith.constant 0 : i32
    %c0_i32_1 = arith.constant 0 : i32
    return %c0_i32, %c0_i32_0 : i32, i32
  }
  func.func @transform_5(%arg0: i32) -> (i32, i32) {
    %c0_i32 = arith.constant 0 : i32
    %c0_i32_0 = arith.constant 0 : i32
    %c0_i32_1 = arith.constant 0 : i32
    return %c0_i32, %c0_i32_0 : i32, i32
  }
  func.func @transform_6(%arg0: i32) -> (i32, i32) {
    %c0_i32 = arith.constant 0 : i32
    %c0_i32_0 = arith.constant 0 : i32
    %c0_i32_1 = arith.constant 0 : i32
    return %c0_i32, %c0_i32_0 : i32, i32
  }
  func.func @transform_7(%arg0: i32) -> (i32, i32) {
    %c0_i32 = arith.constant 0 : i32
    %c0_i32_0 = arith.constant 0 : i32
    return %arg0, %c0_i32 : i32, i32
  }
}

</mosaic_0001>

<bundles_post_ra>
// kernel: subspace_mlp_forward.1
= control target key start
LH: loop header
LB: loop body
LE: loop exit
PB: predicated region body
PF: predicated region fallthrough
CT: control target
= control target key end

     0   :  { %12 = vsyncpa [#allocation3], 0  ;;  %s1752_s0 = inlined_call_operand.hbm [shape: f32[20,128], index: 0, kind: input, shape index: {}]   ;;  %s1753_s1 = inlined_call_operand.hbm [shape: f32[128,128], index: 1, kind: input, shape index: {}]   ;;  %s1754_s2 = inlined_call_operand.vmem [shape: f32[1,128], index: 2, kind: input, shape index: {}]   ;;  %s1755_s3 = inlined_call_operand.hbm [shape: f32[128,128], index: 3, kind: input, shape index: {}]   ;;  %s1756_s4 = inlined_call_operand.vmem [shape: f32[1,128], index: 4, kind: input, shape index: {}]   ;;  %s1757_s5 = inlined_call_operand.hbm [shape: f32[128,384], index: 5, kind: input, shape index: {}]   ;;  %s1758_s6 = inlined_call_operand.vmem [shape: f32[1,384], index: 6, kind: input, shape index: {}]   ;;  %s1759_s7 = inlined_call_operand.hbm [shape: f32[20,384], index: 7, kind: output, shape index: {}]  }
   0x1   :  { %14 = vsyncpa [#allocation3 + $0x1], 0 }
   0x2   :  { %15 = vsyncpa [#allocation6], 0 }
   0x3   :  { %16 = vsyncpa [#allocation9], 0 }
   0x4   :  { %17 = vsyncpa [#allocation4], 0 }
   0x5   :  { %19 = vsyncpa [#allocation4 + $0x1], 0  ;;  %s1456_s24 = smov 0   ;;  %s1458_s25 = smov 0  }
   0x6   :  { %s1460_s26 = smov 0   ;;  %s1462_s27 = smov 0  }
   0x7 LB: > { %s1477_s28 = sadd.s32 4294967295, %s1402_s27   ;;  %s850_s29 = sadd.s32 4294967294, %s1402_s27   ;;  %s1402_s27 = sphi %s1462_s27, %s1784_s27   ;;  %s1398_s26 = sphi %s1460_s26, %s1783_s26   ;;  %s1394_s25 = sphi %s1458_s25, %s1782_s25   ;;  %s1390_s24 = sphi %s1456_s24, %s1781_s24  }
   0x8   : > { %p45_p0 = scmp.ne.s32.totalorder %s1394_s25, %s1390_s24  ;;  %p1760_p1 = scmp.eq.s32.totalorder %s1477_s28, 0 }
   0x9   : > { %p201_p3 = scmp.eq.s32.totalorder %s850_s29, 2  ;;  %p851_p5 = scmp.ge.s32.totalorder %s1402_s27, 1 }
   0xa   : > { %p1486_p4 = por %p1760_p1, %p45_p0  ;;  %p208_p7 = scmp.lt.s32.totalorder %s1402_s27, 4 }
   0xb   : > { %p1491_p6 = por %p201_p3, %p45_p0  ;;  %s1404_s10 = smov [#allocation5]  }
   0xc   : > { %s1764_s30 = scalar_select %p1486_p4, 1, 0 }
   0xd   : > { %s1765_s8 = scalar_select %p1491_p6, 1, 0 }
   0xe   : > { %p1496_p8 = pnand %p851_p5, %p208_p7  ;;  %s220_s11 = sshll.u32 %s1404_s10, 4  ;;  %s1500_s11 = int_to_ptr.vmem [resolvable:$true] %s220_s11 }
   0xf   : > { %1766 = sst [smem:[#allocation15_spill]] %s1765_s8  ;;  %s1405_s13 = smov [#allocation7]  }
  0x10   : > { %s1767_s9 = scalar_select %p1496_p8, 1, 0 }
  0x11   : > { %p1146_p9 = pneg %p1496_p8  ;;  %s236_s14 = sshll.u32 %s1405_s13, 4  ;;  %s1510_s14 = int_to_ptr.vmem [resolvable:$true] %s236_s14 }
  0x12   : > { %s1406_s15 = smov [#allocation8]   ;;  %s1214_s19 = scalar_lea.hbm %s1753_s1, 2048 }
  0x13   : > { %p1506_p10 = pnand %p1146_p9, %p1760_p1  ;;  %s1512_s16 = sshll.u32 %s1406_s15, 4  ;;  %s253_s16 = int_to_ptr.vmem [resolvable:$true] %s1512_s16 }
  0x14   : > { %p1215_p11 = scmp.ne.s32.totalorder %s1753_s1, %s1214_s19  ;;  %p1221_p3 = scmp.lt.u32.totalorder %s1214_s19, %s1753_s1 }
  0x15   : > { %p1522_p12 = pneg %p1506_p10 }
  0x17   : > { %p1217_p13 = pnand %p1522_p12, %p1215_p11 }
  0x19   : > { %p1218_p0 = pneg %p1217_p13 }
  0x1b   : > { %p1223_p5 = pnand %p1221_p3, %p1218_p0 }
  0x1d   : > { %1226 = shalt.err (!%p1223_p5)
}
  0x1e   : > { %s1227_s10 = scalar_lea.vmem %s1500_s11, 2048  ;;  %p1235_p2 = scmp.lt.s32.totalorder %s1500_s11, %s1500_s11 }
  0x1f   : > { %p1228_p7 = scmp.ne.s32.totalorder %s1500_s11, %s1227_s10  ;;  %p1236_p6 = scmp.lt.s32.totalorder %s1227_s10, %s1227_s10 }
  0x21   : > { %p1230_p9 = pnand %p1228_p7, %p1522_p12  ;;  %p1237_p11 = por %p1236_p6, %p1235_p2 }
  0x23   : > { %p1231_p1 = pneg %p1230_p9 }
  0x25   : > { %p1238_p13 = pnand %p1237_p11, %p1231_p1 }
  0x27   : > { %1241 = shalt.err (!%p1238_p13)
}
  0x28   : > { %s1407_s13 = smov 128   ;;  %s1408_s15 = smov 8  }
  0x29   : > { %1149 = dma.hbm_to_vmem [thread:$0]  (!%p1506_p10), %s1753_s1, 2048, %s1500_s11, [#allocation6], %s1407_s13, %s1407_s13, %s1408_s15  }
  0x2a   : > { %s1242_s21 = scalar_lea.hbm %s1755_s3, 2048 }
  0x2b   : > { %p1243_p2 = scmp.ne.s32.totalorder %s1755_s3, %s1242_s21  ;;  %p1249_p0 = scmp.lt.u32.totalorder %s1242_s21, %s1755_s3 }
  0x2d   : > { %p1245_p1 = pnand %p1243_p2, %p1522_p12 }
  0x2f   : > { %p1246_p6 = pneg %p1245_p1 }
  0x31   : > { %p1251_p3 = pnand %p1249_p0, %p1246_p6 }
  0x33   : > { %1254 = shalt.err (!%p1251_p3)
}
  0x34   : > { %s1255_s11 = scalar_lea.vmem %s1510_s14, 2048  ;;  %p1263_p11 = scmp.lt.s32.totalorder %s1510_s14, %s1510_s14 }
  0x35   : > { %p1256_p5 = scmp.ne.s32.totalorder %s1510_s14, %s1255_s11  ;;  %p1264_p13 = scmp.lt.s32.totalorder %s1255_s11, %s1255_s11 }
  0x37   : > { %p1258_p7 = pnand %p1256_p5, %p1522_p12  ;;  %p1265_p2 = por %p1264_p13, %p1263_p11 }
  0x39   : > { %p1259_p9 = pneg %p1258_p7 }
  0x3b   : > { %p1266_p1 = pnand %p1265_p2, %p1259_p9 }
  0x3d   : > { %1269 = shalt.err (!%p1266_p1)
}
  0x3e   : > { %1152 = dma.hbm_to_vmem [thread:$0]  (!%p1506_p10), %s1755_s3, 2048, %s1510_s14, [#allocation6], %s1407_s13, %s1407_s13, %s1408_s15  }
  0x3f   : > { %s1270_s20 = scalar_lea.hbm %s1757_s5, 6144 }
  0x40   : > { %p1271_p6 = scmp.ne.s32.totalorder %s1757_s5, %s1270_s20  ;;  %p1277_p5 = scmp.lt.u32.totalorder %s1270_s20, %s1757_s5 }
  0x42   : > { %p1273_p0 = pnand %p1271_p6, %p1522_p12 }
  0x44   : > { %p1274_p3 = pneg %p1273_p0 }
  0x46   : > { %p1279_p7 = pnand %p1277_p5, %p1274_p3 }
  0x48   : > { %1282 = shalt.err (!%p1279_p7)
}
  0x49   : > { %s1283_s11 = scalar_lea.vmem %s253_s16, 6144  ;;  %p1291_p2 = scmp.lt.s32.totalorder %s253_s16, %s253_s16 }
  0x4a   : > { %p1284_p9 = scmp.ne.s32.totalorder %s253_s16, %s1283_s11  ;;  %p1292_p1 = scmp.lt.s32.totalorder %s1283_s11, %s1283_s11 }
  0x4c   : > { %p1286_p11 = pnand %p1284_p9, %p1522_p12  ;;  %p1293_p4 = por %p1292_p1, %p1291_p2 }
  0x4e   : > { %p1287_p13 = pneg %p1286_p11 }
  0x50   : > { %p1294_p8 = pnand %p1293_p4, %p1287_p13 }
  0x52   : > { %1297 = shalt.err (!%p1294_p8)
}
  0x53   : > { %s1409_s14 = smov 384   ;;  %s1410_s22 = smov 24  }
  0x54   : > { %1155 = dma.hbm_to_vmem [thread:$0]  (!%p1506_p10), %s1757_s5, 6144, %s253_s16, [#allocation9], %s1409_s14, %s1409_s14, %s1410_s22  }
  0x55   : > { %s1586_s8 = sadd.s32 1, %s1402_s27   ;;  %s32_s18 = sadd.s32 1, %s1398_s26 }
  0x56   : > { %s29_s17 = ssub.s32 %s1402_s27, %s1586_s8  ;;  %p39_p8 = scmp.ne.s32.totalorder %s1398_s26, %s1394_s25 }
  0x57   : > { %p30_p4 = scmp.eq.s32.totalorder %s29_s17, 0  ;;  %p40_p12 = scmp.eq.s32.totalorder %s1402_s27, 0 }
  0x58   : > { %p1167_p6 = scmp.lt.s32.totalorder %s1402_s27, 3  ;;  %p1770_p3 = scmp.eq.s32.totalorder %s1477_s28, 2 }
  0x59   : > { %s1596_s19 = scalar_select %p30_p4, %s1398_s26, %s32_s18  }
  0x5a   : > { %p41_p0 = por %p40_p12, %p39_p8  ;;  %p1600_p5 = por %p1770_p3, %p39_p8 }
  0x5b   : > { %s269_s12 = sand.u32 1, %s1398_s26   ;;  %s857_s21 = sshll.u32 %s1402_s27, 7 }
  0x5c   : > { %s856_s16 = sshll.u32 %s269_s12, 3  ;;  %s1609_s10 = scalar_lea.hbm %s1752_s0, %s857_s21 }
  0x5d   : > { %s273_s11 = scalar_lea.vmem [#allocation2], %s856_s16  ;;  %p1611_p10 = pnand %p1167_p6, %p41_p0 }
  0x5e   : > { %s280_s14 = sshll.u32 %s273_s11, 4  ;;  %s270_s13 = scalar_lea.sflag [#allocation3], %s269_s12  ;;  %s1615_s14 = int_to_ptr.vmem [resolvable:$true] %s280_s14 }
  0x5f   : > { %s1298_s15 = scalar_lea.hbm %s1609_s10, 128  ;;  %p1300_p9 = pneg %p1611_p10 }
  0x60   : > { %p1299_p7 = scmp.ne.s32.totalorder %s1609_s10, %s1298_s15  ;;  %s1303_s21 = scalar_lea.hbm %s1752_s0, 384 }
  0x61   : > { %p1304_p2 = scmp.lt.u32.totalorder %s1609_s10, %s1752_s0  ;;  %p1305_p1 = scmp.lt.u32.totalorder %s1303_s21, %s1298_s15 }
  0x62   : > { %p1301_p11 = pnand %p1300_p9, %p1299_p7  ;;  %p1307_p8 = scmp.lt.u32.totalorder %s1298_s15, %s1609_s10 }
  0x63   : > { %p1306_p4 = por %p1305_p1, %p1304_p2 }
  0x64   : > { %p1302_p13 = pneg %p1301_p11 }
  0x65   : > { %p1308_p12 = por %p1307_p8, %p1306_p4 }
  0x67   : > { %p1309_p6 = pnand %p1308_p12, %p1302_p13 }
  0x69   : > { %1312 = shalt.err (!%p1309_p6)
}
  0x6a   : > { %s1313_s12 = scalar_lea.vmem %s1615_s14, 128  ;;  %s1411_s29 = smov [#allocation2]  }
  0x6b   : > { %p1314_p0 = scmp.ne.s32.totalorder %s1615_s14, %s1313_s12  ;;  %s1318_s11 = sshll.u32 %s1411_s29, 4  ;;  %s1319_s11 = int_to_ptr.vmem [resolvable:$false] %s1318_s11 }
  0x6c   : > { %s1320_s17 = scalar_lea.vmem %s1319_s11, 256  ;;  %p1321_p11 = scmp.lt.s32.totalorder %s1615_s14, %s1319_s11 }
  0x6d   : > { %p1316_p3 = pnand %p1314_p0, %p1300_p9  ;;  %p1322_p2 = scmp.lt.s32.totalorder %s1320_s17, %s1313_s12 }
  0x6f   : > { %p1317_p7 = pneg %p1316_p3  ;;  %p1323_p1 = por %p1322_p2, %p1321_p11 }
  0x71   : > { %p1324_p4 = pnand %p1323_p1, %p1317_p7 }
  0x73   : > { %1327 = shalt.err (!%p1324_p4)
}
  0x74   : > { %1159 = dma.hbm_to_vmem [thread:$0]  (!%p1611_p10), %s1609_s10, 128, %s1615_s14, %s270_s13  }
  0x75   : > { %p1773_p13 = scmp.ne.s32.totalorder %s1767_s9, 0 }
  0x76   : > { %s1645_s15 = sand.u32 (!%p1773_p13), 1, %s1394_s25   ;;  %p1774_p9 = scmp.ne.s32.totalorder (!%p1773_p13), %s1764_s30, 0 }
  0x77   : > { %289 = sbr.rel (%p1773_p13) target bundleno = 830 (0x33e), region = 48  ;;  %s859_s18 = sshll.u32 (!%p1773_p13), %s1645_s15, 3 }
  0x78   : > { %s292_s21 = scalar_lea.sflag (!%p1773_p13), [#allocation3], %s1645_s15  ;;  %s1649_s16 = scalar_lea.vmem (!%p1773_p13), [#allocation2], %s859_s18 }
  0x7e   : > { %1373 = dma.done.wait (%p1774_p9), %s292_s21, 128  }
  0x7f   : > { %1375 = vsyncadd (%p1774_p9), %s292_s21, 4294967168  ;;  %p1775_p10 = scmp.eq.s32.totalorder %s1477_s28, 0 }
  0x81   : > { %1377 = dma.done.wait (%p1775_p10), [#allocation6], 4096   ;;  %p1776_p8 = pmov %p1775_p10 }
  0x83   : > { %1379 = vsyncadd (%p1776_p8), [#allocation6], 4294963200  ;;  %p1777_p12 = pmov %p1776_p8 }
  0x84   : > { %p1778_p6 = pmov %p1776_p8 }
  0x85   : > { %1381 = dma.done.wait (%p1777_p12), [#allocation9], 6144  }
  0x86   : > { %1383 = vsyncadd (%p1778_p6), [#allocation9], 4294961152  ;;  %v1412_v0 = vmov 0.0|0.0   ;;  %vm1413_vm0 = vmmov 0   ;;  %v1414_v1 = vmov 0.0   ;;  %v339_v2 = vld [vmem:[#allocation5] sm:$0xff] }
  0x87   : > { %1024 = vmatprep.subr.bf16.mxu0 %v1412_v0  ;;  %951 = vmatprep.mubr.msk.f32.mxu0 %vm1413_vm0, %v1414_v1  ;;  %v340_v3 = vld [vmem:[#allocation5 + $0x8] sm:$0xff]  ;;  %v341_v4 = vld [vmem:[#allocation5 + $0x10] sm:$0xff]  ;;  %v342_v6 = vld [vmem:[#allocation5 + $0x18] sm:$0xff]  ;;  %s1128_s22 = smul.u32 24, %s1645_s15  ;;  %s1415_s30 = smov [#allocation10]  }
  0x88   : > { %1048 = vmatprep.subr.bf16.mxu1 %v1412_v0  ;;  %986 = vmatprep.mubr.msk.f32.mxu1 %vm1413_vm0, %v1414_v1  ;;  %v1025_v5 = vpack.c.bf16 %v340_v3, %v339_v2  ;;  %v1028_v7 = vpack.c.bf16 %v342_v6, %v341_v4  ;;  %v343_v8 = vld [vmem:[#allocation5 + $0x20] sm:$0xff]  ;;  %v344_v9 = vld [vmem:[#allocation5 + $0x28] sm:$0xff]  ;;  %v435_v12 = vld [vmem:[#allocation7 + $0x10] sm:$0xff]  ;;  %s1129_s12 = smul.u32 384, %s1477_s28  ;;  %s737_s28 = scalar_lea.sflag [#allocation4], %s1645_s15 }
  0x89   : > { %v433_v10 = vld [vmem:[#allocation7] sm:$0xff]  ;;  %v434_v11 = vld [vmem:[#allocation7 + $0x8] sm:$0xff]  ;;  %v436_v13 = vld [vmem:[#allocation7 + $0x18] sm:$0xff]  ;;  %v1031_v14 = vpack.c.bf16 %v344_v9, %v343_v8  ;;  %s337_s29 = scalar_lea.vmem [#allocation10], %s1128_s22  ;;  %s1332_s9 = sshll.u32 %s1415_s30, 4  ;;  %s1333_s9 = int_to_ptr.vmem [resolvable:$false] %s1332_s9 }
  0x8a   : > { %1026 = vmatpush3.bf16.msra.mxu0 %v1025_v5  ;;  %v1049_v15 = vpack.c.bf16 %v434_v11, %v433_v10  ;;  %v345_v16 = vld [vmem:[#allocation5 + $0x30] sm:$0xff]  ;;  %v346_v17 = vld [vmem:[#allocation5 + $0x38] sm:$0xff]  ;;  %v1052_v18 = vpack.c.bf16 %v436_v13, %v435_v12  ;;  %v437_v19 = vld [vmem:[#allocation7 + $0x20] sm:$0xff]  ;;  %s751_s11 = sshll.u32 %s337_s29, 4  ;;  %s1709_s21 = scalar_lea.hbm %s1759_s7, %s1129_s12  ;;  %s1711_s11 = int_to_ptr.vmem [resolvable:$true] %s751_s11 }
  0x8b   : > { %1027 = vmatprep.subr.bf16.mxu0 %v1412_v0  ;;  %v438_v20 = vld [vmem:[#allocation7 + $0x28] sm:$0xff]  ;;  %v1034_v21 = vpack.c.bf16 %v346_v17, %v345_v16  ;;  %v347_v22 = vld [vmem:[#allocation5 + $0x40] sm:$0xff]  ;;  %v439_v25 = vld [vmem:[#allocation7 + $0x30] sm:$0xff]  ;;  %s1334_s10 = scalar_lea.vmem %s1333_s9, 768  ;;  %p1335_p11 = scmp.lt.s32.totalorder %s1711_s11, %s1333_s9 }
  0x8c   : > { %1050 = vmatpush3.bf16.msra.mxu1 %v1049_v15  ;;  %v348_v23 = vld [vmem:[#allocation5 + $0x48] sm:$0xff]  ;;  %v1055_v24 = vpack.c.bf16 %v438_v20, %v437_v19  ;;  %v440_v26 = vld [vmem:[#allocation7 + $0x38] sm:$0xff]  ;;  %v349_v28 = vld [vmem:[#allocation5 + $0x50] sm:$0xff] }
  0x8d   : > { %1051 = vmatprep.subr.bf16.mxu1 %v1412_v0  ;;  %v1037_v27 = vpack.c.bf16 %v348_v23, %v347_v22  ;;  %v350_v29 = vld [vmem:[#allocation5 + $0x58] sm:$0xff]  ;;  %v1058_v30 = vpack.c.bf16 %v440_v26, %v439_v25  ;;  %v441_v31 = vld [vmem:[#allocation7 + $0x40] sm:$0xff]  ;;  %v442_v32 = vld [vmem:[#allocation7 + $0x48] sm:$0xff] }
  0x8e   : > { %1029 = vmatpush3.bf16.msra.mxu0 %v1028_v7  ;;  %v1040_v33 = vpack.c.bf16 %v350_v29, %v349_v28  ;;  %v351_v34 = vld [vmem:[#allocation5 + $0x60] sm:$0xff]  ;;  %v352_v35 = vld [vmem:[#allocation5 + $0x68] sm:$0xff]  ;;  %v1061_v36 = vpack.c.bf16 %v442_v32, %v441_v31  ;;  %v443_v37 = vld [vmem:[#allocation7 + $0x50] sm:$0xff] }
  0x8f   : > { %1030 = vmatprep.subr.bf16.mxu0 %v1412_v0  ;;  %v444_v38 = vld [vmem:[#allocation7 + $0x58] sm:$0xff]  ;;  %v1043_v39 = vpack.c.bf16 %v352_v35, %v351_v34  ;;  %v353_v40 = vld [vmem:[#allocation5 + $0x70] sm:$0xff]  ;;  %v445_v43 = vld [vmem:[#allocation7 + $0x60] sm:$0xff] }
  0x90   : > { %1053 = vmatpush3.bf16.msra.mxu1 %v1052_v18  ;;  %v354_v41 = vld [vmem:[#allocation5 + $0x78] sm:$0xff]  ;;  %v1064_v42 = vpack.c.bf16 %v444_v38, %v443_v37  ;;  %v446_v44 = vld [vmem:[#allocation7 + $0x68] sm:$0xff]  ;;  %v447_v48 = vld [vmem:[#allocation7 + $0x70] sm:$0xff] }
  0x91   : > { %1054 = vmatprep.subr.bf16.mxu1 %v1412_v0  ;;  %v1046_v45 = vpack.c.bf16 %v354_v41, %v353_v40  ;;  %v1067_v46 = vpack.c.bf16 %v446_v44, %v445_v43  ;;  %v338_v47 = vld [vmem:[%s1649_s16] sm:$0xff]  ;;  %v528_v51 = vld [vmem:[#allocation8 + $0x8] sm:$0xff]  ;;  %v531_v52 = vld [vmem:[#allocation8 + $0x20] sm:$0xff]  ;;  %s1328_s16 = scalar_lea.vmem %s1711_s11, 384 }
  0x92   : > { %1032 = vmatpush3.bf16.msra.mxu0 %v1031_v14  ;;  %v448_v49 = vld [vmem:[#allocation7 + $0x78] sm:$0xff]  ;;  %v527_v53 = vld [vmem:[#allocation8] sm:$0xff]  ;;  %v1072_v54 = vpack.c.bf16 %v531_v52, %v528_v51  ;;  %v537_v58 = vld [vmem:[#allocation8 + $0x50] sm:$0xff]  ;;  %p1329_p0 = scmp.ne.s32.totalorder %s1711_s11, %s1328_s16  ;;  %p1336_p2 = scmp.lt.s32.totalorder %s1334_s10, %s1328_s16 }
  0x93   : > { %1033 = vmatprep.subr.bf16.mxu0 %v1412_v0  ;;  %v1070_v50 = vpack.c.bf16 %v448_v49, %v447_v48  ;;  %v530_v55 = vld [vmem:[#allocation8 + $0x18] sm:$0xff]  ;;  %v533_v59 = vld [vmem:[#allocation8 + $0x30] sm:$0xff]  ;;  %v536_v61 = vld [vmem:[#allocation8 + $0x48] sm:$0xff] }
  0x94   : > { %1056 = vmatpush3.bf16.msra.mxu1 %v1055_v24  ;;  %v1074_v56 = vpack.c.bf16 %v530_v55, %v527_v53  ;;  %v534_v57 = vld [vmem:[#allocation8 + $0x38] sm:$0xff]  ;;  %v1078_v62 = vpack.c.bf16 %v536_v61, %v533_v59  ;;  %v540_v63 = vld [vmem:[#allocation8 + $0x68] sm:$0xff]  ;;  %v543_v2 = vld [vmem:[#allocation8 + $0x80] sm:$0xff]  ;;  %p1330_p3 = pnand %p1329_p0, %p1600_p5  ;;  %p1337_p1 = por %p1336_p2, %p1335_p11 }
  0x95   : > { %1057 = vmatprep.subr.bf16.mxu1 %v1412_v0  ;;  %v1076_v60 = vpack.c.bf16 %v537_v58, %v534_v57  ;;  %v1080_v3 = vpack.c.bf16 %v543_v2, %v540_v63  ;;  %v539_v4 = vld [vmem:[#allocation8 + $0x60] sm:$0xff]  ;;  %v542_v5 = vld [vmem:[#allocation8 + $0x78] sm:$0xff]  ;;  %v549_v8 = vld [vmem:[#allocation8 + $0xb0] sm:$0xff] }
  0x96   : > { %1035 = vmatpush3.bf16.msra.mxu0 %v1034_v21  ;;  %v1082_v6 = vpack.c.bf16 %v542_v5, %v539_v4  ;;  %v546_v7 = vld [vmem:[#allocation8 + $0x98] sm:$0xff]  ;;  %v545_v10 = vld [vmem:[#allocation8 + $0x90] sm:$0xff]  ;;  %v548_v11 = vld [vmem:[#allocation8 + $0xa8] sm:$0xff]  ;;  %p1331_p7 = pneg %p1330_p3 }
  0x97   : > { %1036 = vmatprep.subr.bf16.mxu0 %v1412_v0  ;;  %v1084_v9 = vpack.c.bf16 %v549_v8, %v546_v7  ;;  %v1086_v12 = vpack.c.bf16 %v548_v11, %v545_v10  ;;  %v552_v13 = vld [vmem:[#allocation8 + $0xc8] sm:$0xff]  ;;  %v555_v14 = vld [vmem:[#allocation8 + $0xe0] sm:$0xff]  ;;  %v554_v17 = vld [vmem:[#allocation8 + $0xd8] sm:$0xff]  ;;  %v577_v7 = vlaneseq }
  0x98   : > { %1059 = vmatpush3.bf16.msra.mxu1 %v1058_v30  ;;  %v1088_v15 = vpack.c.bf16 %v555_v14, %v552_v13  ;;  %v551_v16 = vld [vmem:[#allocation8 + $0xc0] sm:$0xff]  ;;  %v558_v19 = vld [vmem:[#allocation8 + $0xf8] sm:$0xff]  ;;  %v561_v20 = vld [vmem:[#allocation8 + $0x110] sm:$0xff]  ;;  %p1338_p4 = pnand %p1337_p1, %p1331_p7 }
  0x99   : > { %1060 = vmatprep.subr.bf16.mxu1 %v1412_v0  ;;  %v1090_v18 = vpack.c.bf16 %v554_v17, %v551_v16  ;;  %v1092_v21 = vpack.c.bf16 %v561_v20, %v558_v19  ;;  %v557_v22 = vld [vmem:[#allocation8 + $0xf0] sm:$0xff]  ;;  %v560_v23 = vld [vmem:[#allocation8 + $0x108] sm:$0xff]  ;;  %v567_v26 = vld [vmem:[#allocation8 + $0x140] sm:$0xff]  ;;  %v578_v8 = vshrl.u32 %v577_v7, 7 }
  0x9a   : > { %1038 = vmatpush3.bf16.msra.mxu0 %v1037_v27  ;;  %v1094_v24 = vpack.c.bf16 %v560_v23, %v557_v22  ;;  %v564_v25 = vld [vmem:[#allocation8 + $0x128] sm:$0xff]  ;;  %v563_v28 = vld [vmem:[#allocation8 + $0x120] sm:$0xff]  ;;  %v566_v29 = vld [vmem:[#allocation8 + $0x138] sm:$0xff] }
  0x9b   : > { %1039 = vmatprep.subr.bf16.mxu0 %v1412_v0  ;;  %v1096_v27 = vpack.c.bf16 %v567_v26, %v564_v25  ;;  %v1098_v30 = vpack.c.bf16 %v566_v29, %v563_v28  ;;  %v863_v31 = vld [vmem:[%s1754_s2] ss:$0 sm:$0xff]  ;;  %v538_v40 = vld [vmem:[#allocation8 + $0x58] sm:$0xff]  ;;  %v544_v43 = vld [vmem:[#allocation8 + $0x88] sm:$0xff]  ;;  %v587_v10 = vsub.s32 2, %v578_v8 }
  0x9c   : > { %1062 = vmatpush3.bf16.msra.mxu1 %v1061_v36  ;;  %v529_v32 = vld [vmem:[#allocation8 + $0x10] sm:$0xff]  ;;  %v556_v49 = vld [vmem:[#allocation8 + $0xe8] sm:$0xff]  ;;  %v562_v51 = vld [vmem:[#allocation8 + $0x118] sm:$0xff] }
  0x9d   : > { %1063 = vmatprep.subr.bf16.mxu1 %v1412_v0  ;;  %v553_v48 = vld [vmem:[#allocation8 + $0xd0] sm:$0xff]  ;;  %v571_v61 = vld [vmem:[#allocation8 + $0x160] sm:$0xff]  ;;  %v574_v63 = vld [vmem:[#allocation8 + $0x178] sm:$0xff] }
  0x9e   : > { %1041 = vmatpush3.bf16.msra.mxu0 %v1040_v33  ;;  %v532_v33 = vld [vmem:[#allocation8 + $0x28] sm:$0xff]  ;;  %v565_v53 = vld [vmem:[#allocation8 + $0x130] sm:$0xff]  ;;  %v1126_v2 = vpack.c.bf16 %v574_v63, %v571_v61 }
  0x9f   : > { %1042 = vmatprep.subr.bf16.mxu0 %v1412_v0  ;;  %v1105_v37 = vpack.c.bf16 %v532_v33, %v529_v32  ;;  %v573_v57 = vld [vmem:[#allocation8 + $0x170] sm:$0xff] }
  0xa0   : > { %1065 = vmatpush3.bf16.msra.mxu1 %v1064_v42  ;;  %v541_v42 = vld [vmem:[#allocation8 + $0x70] sm:$0xff] }
  0xa1   : > { %1066 = vmatprep.subr.bf16.mxu1 %v1412_v0  ;;  %v1111_v44 = vpack.c.bf16 %v544_v43, %v541_v42  ;;  %v569_v59 = vld [vmem:[#allocation8 + $0x150] sm:$0xff] }
  0xa2   : > { %1044 = vmatpush3.bf16.msra.mxu0 %v1043_v39  ;;  %v535_v39 = vld [vmem:[#allocation8 + $0x40] sm:$0xff]  ;;  %v575_v11 = vld [vmem:[%s1758_s6] sm:$0x7] }
  0xa3   : > { %1045 = vmatprep.subr.bf16.mxu0 %v1412_v0  ;;  %v1108_v41 = vpack.c.bf16 %v538_v40, %v535_v39  ;;  %v588_v14 = vrot.slane %v575_v11, %v587_v10 }
  0xa4   : > { %1068 = vmatpush3.bf16.msra.mxu1 %v1067_v46  ;;  %v550_v46 = vld [vmem:[#allocation8 + $0xb8] sm:$0xff] }
  0xa5   : > { %1069 = vmatprep.subr.bf16.mxu1 %v1412_v0 }
  0xa6   : > { %1047 = vmatpush3.bf16.msra.mxu0 %v1046_v45  ;;  %v547_v45 = vld [vmem:[#allocation8 + $0xa0] sm:$0xff] }
  0xa7   : > { %1073 = vmatprep.subr.bf16.mxu0 %v1072_v54  ;;  %v568_v54 = vld [vmem:[#allocation8 + $0x148] sm:$0xff] }
  0xa8   : > { %1071 = vmatpush3.bf16.msra.mxu1 %v1070_v50  ;;  %v1117_v50 = vpack.c.bf16 %v556_v49, %v553_v48  ;;  %v1123_v55 = vpack.c.bf16 %v568_v54, %v565_v53 }
  0xa9   : > { %952 = vmatmul.mubr.f32.vlgmr.msra.gmra.mrb[0].mxu0 %v338_v47  ;;  %1104 = vmatprep.subr.bf16.mxu1 %v1412_v0  ;;  %v1114_v47 = vpack.c.bf16 %v550_v46, %v547_v45 }
  0xaa   : > { %656 = vmatprep.mubr.f32.mxu0 %v1414_v1  ;;  %1075 = vmatpush1.bf16.msra.mxu0 %v1074_v56  ;;  %v570_v56 = vld [vmem:[#allocation8 + $0x158] sm:$0xff] }
  0xab   : > { %1077 = vmatprep.subr.bf16.mxu0 %v1076_v60  ;;  %v1100_v58 = vpack.c.bf16 %v573_v57, %v570_v56  ;;  %v572_v60 = vld [vmem:[#allocation8 + $0x168] sm:$0xff] }
  0xae   : > { %1079 = vmatpush1.bf16.msra.mxu0 %v1078_v62  ;;  %v1102_v62 = vpack.c.bf16 %v572_v60, %v569_v59 }
  0xaf   : > { %1081 = vmatprep.subr.bf16.mxu0 %v1080_v3  ;;  %v864_v3 = vld [vmem:[%s1756_s4] ss:$0 sm:$0xff] }
  0xb2   : > { %1083 = vmatpush1.bf16.msra.mxu0 %v1082_v6 }
  0xb3   : > { %1085 = vmatprep.subr.bf16.mxu0 %v1084_v9  ;;  %v579_v9 = vsub.s32 0, %v578_v8 }
  0xb5   : > { %v580_v13 = vrot.slane %v575_v11, %v579_v9 }
  0xb6   : > { %1087 = vmatpush1.bf16.msra.mxu0 %v1086_v12  ;;  %v583_v12 = vsub.s32 1, %v578_v8 }
  0xb7   : > { %1089 = vmatprep.subr.bf16.mxu0 %v1088_v15 }
  0xb8   : > { %v584_v15 = vrot.slane %v575_v11, %v583_v12 }
  0xba   : > { %1091 = vmatpush1.bf16.msra.mxu0 %v1090_v18 }
  0xbb   : > { %1093 = vmatprep.subr.bf16.mxu0 %v1092_v21 }
  0xbe   : > { %1095 = vmatpush1.bf16.msra.mxu0 %v1094_v24 }
  0xbf   : > { %1097 = vmatprep.subr.bf16.mxu0 %v1096_v27 }
  0xc2   : > { %1099 = vmatpush1.bf16.msra.mxu0 %v1098_v30 }
  0xc3   : > { %1101 = vmatprep.subr.bf16.mxu0 %v1100_v58 }
  0xc6   : > { %1103 = vmatpush1.bf16.msra.mxu0 %v1102_v62 }
 0x17c   : > { %v428_v34 = vpop.f32.mrb[0].mxu0 }
 0x17d   : > { %v429_v35 = vadd.f32 %v863_v31, %v428_v34  ;;  %v953_v36 = vpop.f32.mrb[1].mxu0 }
 0x17f   : > { %v432_v38 = vmax.f32 %v429_v35, 0.0 }
 0x181   : > { %987 = vmatmul.mubr.f32.vlgmr.msra.gmra.mrb[0].mxu1 %v432_v38 }
 0x182   : > { %1106 = vmatpush3.bf16.msra.mxu1 %v1105_v37  ;;  %1021 = vmatprep.mubr.msk.f32.mxu1 %vm1413_vm0, %v1414_v1  ;;  %v559_v1 = vld [vmem:[#allocation8 + $0x100] sm:$0xff] }
 0x183   : > { %1107 = vmatprep.subr.bf16.mxu1 %v1412_v0  ;;  %v1120_v52 = vpack.c.bf16 %v562_v51, %v559_v1 }
 0x186   : > { %1109 = vmatpush3.bf16.msra.mxu1 %v1108_v41 }
 0x187   : > { %1110 = vmatprep.subr.bf16.mxu1 %v1412_v0 }
 0x18a   : > { %1112 = vmatpush3.bf16.msra.mxu1 %v1111_v44 }
 0x18b   : > { %1113 = vmatprep.subr.bf16.mxu1 %v1412_v0 }
 0x18e   : > { %1115 = vmatpush3.bf16.msra.mxu1 %v1114_v47 }
 0x18f   : > { %1116 = vmatprep.subr.bf16.mxu1 %v1412_v0 }
 0x192   : > { %1118 = vmatpush3.bf16.msra.mxu1 %v1117_v50 }
 0x193   : > { %1119 = vmatprep.subr.bf16.mxu1 %v1412_v0 }
 0x196   : > { %1121 = vmatpush3.bf16.msra.mxu1 %v1120_v52 }
 0x197   : > { %1122 = vmatprep.subr.bf16.mxu1 %v1412_v0 }
 0x19a   : > { %1124 = vmatpush3.bf16.msra.mxu1 %v1123_v55 }
 0x19b   : > { %1125 = vmatprep.subr.bf16.mxu1 %v1412_v0 }
 0x19e   : > { %1127 = vmatpush3.bf16.msra.mxu1 %v1126_v2 }
 0x254   : > { %v522_v4 = vpop.f32.mrb[0].mxu1 }
 0x255   : > { %v523_v0 = vadd.f32 %v864_v3, %v522_v4  ;;  %v988_v5 = vpop.f32.mrb[1].mxu1 }
 0x257   : > { %v526_v6 = vmax.f32 %v523_v0, 0.0 }
 0x259   : > { %657 = vmatmul.mubr.f32.vlgmr.msra.gmra.mrb[2].mxu0 %v526_v6  ;;  %1022 = vmatmul.mubr.f32.vlgmr.msra.gmra.mrb[2].mxu1 %v526_v6 }
 0x32c   : > { %v658_v16 = vpop.f32.mrb[2].mxu0  ;;  %v729_v17 = vpop.f32.mrb[2].mxu1 }
 0x32d   : > { %v659_v18 = vadd.f32 %v658_v16, %v580_v13  ;;  %v730_v19 = vadd.f32 %v729_v17, %v588_v14  ;;  %v660_v20 = vpop.f32.mrb[3].mxu0  ;;  %v1023_v21 = vpop.f32.mrb[3].mxu1 }
 0x32e   : > { %v661_v22 = vadd.f32 %v660_v20, %v584_v15 }
 0x32f   : > { %733 = vst [vmem:[%s337_s29] sm:$0xff] %v659_v18  ;;  %735 = vst [vmem:[%s337_s29 + $0x10] sm:$0xff] %v730_v19 }
 0x330   : > { %734 = vst [vmem:[%s337_s29 + $0x8] sm:$0xff] %v661_v22 }
 0x331   : > { %1341 = shalt.err (!%p1338_p4)
}
 0x332   : > { %s1342_s15 = scalar_lea.hbm %s1709_s21, 384  ;;  %s1346_s13 = scalar_lea.hbm %s1759_s7, 1152 }
 0x333   : > { %p1343_p13 = scmp.ne.s32.totalorder %s1709_s21, %s1342_s15  ;;  %p1347_p8 = scmp.lt.u32.totalorder %s1709_s21, %s1759_s7 }
 0x334   : > { %p1348_p12 = scmp.lt.u32.totalorder %s1346_s13, %s1342_s15  ;;  %p1350_p0 = scmp.lt.u32.totalorder %s1342_s15, %s1709_s21 }
 0x335   : > { %p1344_p9 = pnand %p1343_p13, %p1600_p5 }
 0x336   : > { %p1349_p6 = por %p1348_p12, %p1347_p8 }
 0x337   : > { %p1345_p10 = pneg %p1344_p9 }
 0x338   : > { %p1351_p3 = por %p1350_p0, %p1349_p6 }
 0x33a   : > { %p1352_p7 = pnand %p1351_p3, %p1345_p10 }
 0x33c   : > { %1355 = shalt.err (!%p1352_p7)
}
 0x33d   : > { %1144 = dma.vmem_to_hbm [thread:$0]  (%p1600_p5), %s1711_s11, 384, %s1709_s21, %s737_s28  }
 0x33e PF: > { %s1779_s29 = sld [smem:[#allocation15_spill]]  ;;  %p1171_p11 = scmp.ge.s32.totalorder %s1402_s27, 2 }
 0x33f   : > { %s763_s17 = sand.u32 1, %s1390_s24  }
 0x340   : > { %s764_s18 = scalar_lea.sflag [#allocation4], %s763_s17 }
 0x344   : > { %p1780_p2 = scmp.ne.s32.totalorder %s1779_s29, 0 }
 0x346   : > { %p1161_p1 = pnand %p1171_p11, %p1780_p2 }
 0x348   : > { %1385 = dma.done.wait (!%p1161_p1), %s764_s18, 384  }
 0x349   : > { %1387 = vsyncadd (!%p1161_p1), %s764_s18, 4294966912  ;;  %p22_p4 = scmp.ge.s32.totalorder %s1586_s8, 5   ;;  %s1781_s24 = smov %s1394_s25 }
 0x34a   : > { %s1782_s25 = smov %s1398_s26  ;;  %s1783_s26 = smov %s1596_s19 }
 0x34b   : > { %s1784_s27 = smov %s1586_s8  ;;  %24 = sbr.rel (!%p22_p4) target bundleno = 7 (0x7), region = 105 }
 0x352   :  { %769 = vsyncpa [#allocation3], 1 }
 0x353   :  { %771 = vsyncpa [#allocation3 + $0x1], 1 }
 0x354   :  { %772 = vsyncpa [#allocation6], 1 }
 0x355   :  { %773 = vsyncpa [#allocation9], 1 }
 0x356   :  { %774 = vsyncpa [#allocation4], 1 }
 0x357   :  { %776 = vsyncpa [#allocation4 + $0x1], 1 }

</bundles_post_ra>
